<compile_context>
chip_gen: v6e
topology: v6e:2x2x1
jax: 0.10.0
libtpu: 0.0.40
codegen_flags: <defaults>
</compile_context>

<pallas_src>
import functools

import jax
import jax.numpy as jnp
from jax import lax
from jax.experimental import pallas as pl
from jax.experimental.pallas import tpu as pltpu

_LANE = 128
_SUBLANE = 8
_MAX_TILE_N = 8192       # upper cap on rows per grid step
_MIN_TILE_N = 512        # lower cap (amortize ~0.35us per-step overhead)
_TARGET_TILES = 4        # keep >= 4 tiles so the "parallel" axis can shard on v7x megacore
_NEG = -1e30             # fill value for padded vocab columns (assumes |table| << 1e30)


def _round_up(x, m):
    return (x + m - 1) // m * m


# ---------------------------------------------------------------------------
# Kernels
# ---------------------------------------------------------------------------

def _bigram_train_kernel(packed_ref, table_ref, logits_ref, loss_ref, *, n_valid):
    # packed_ref : (TILE_N, 2)     int32   [:,0] = idx, [:,1] = target
    # table_ref  : (V_PAD, V_PAD)  float32 (cols >= V filled with -1e30)
    # logits_ref : (TILE_N, V)     float32 (native vocab width, no padding)
    # loss_ref   : (1, 1, 1)       float32 per-tile partial CE sum
    tile_n, v_out = logits_ref.shape
    v_pad = table_ref.shape[0]

    col = lax.broadcasted_iota(jnp.int32, (1, v_pad), 1)          # (1, V_PAD), broadcast in compares
    idx = packed_ref[:, 0:1]                                       # (TILE_N, 1)
    tgt = packed_ref[:, 1:2]                                       # (TILE_N, 1)

    # Embedding gather as one-hot matmul (MXU).
    one_hot = (col == idx).astype(jnp.float32)                     # (TILE_N, V_PAD)
    logits = jnp.dot(one_hot, table_ref[...],
                     preferred_element_type=jnp.float32)           # (TILE_N, V_PAD)

    # Store only the real vocab columns (lane-sliced masked store; HBM gets V*4 B/row).
    logits_ref[...] = logits[:, :v_out]

    # Per-row cross-entropy on the padded width: padded lanes are -1e30 so
    # exp(.) == 0 there and row_max comes from real lanes.
    row_max = jnp.max(logits, axis=-1, keepdims=True)                         # (TILE_N, 1)
    lse = row_max + jnp.log(
        jnp.sum(jnp.exp(logits - row_max), axis=-1, keepdims=True))           # (TILE_N, 1)
    tgt_logit = jnp.sum(jnp.where(col == tgt, logits, 0.0),
                        axis=-1, keepdims=True)                               # (TILE_N, 1)

    # Mask padded rows of the last tile, reduce to a single per-tile partial sum.
    row = pl.program_id(0) * tile_n + lax.broadcasted_iota(jnp.int32, (tile_n, 1), 0)
    ce = jnp.where(row < n_valid, lse - tgt_logit, 0.0)                       # (TILE_N, 1)
    tile_sum = jnp.sum(ce, axis=0, keepdims=True)                             # (1, 1)
    loss_ref[...] = tile_sum.reshape(1, 1, 1)


def _bigram_infer_kernel(idx_ref, table_ref, logits_ref):
    # Inference path: gather only, no cross-entropy work.
    v_out = logits_ref.shape[-1]
    v_pad = table_ref.shape[0]
    col = lax.broadcasted_iota(jnp.int32, (1, v_pad), 1)
    one_hot = (col == idx_ref[...]).astype(jnp.float32)
    logits = jnp.dot(one_hot, table_ref[...], preferred_element_type=jnp.float32)
    logits_ref[...] = logits[:, :v_out]


# ---------------------------------------------------------------------------
# Wrapper
# ---------------------------------------------------------------------------

def _pad_table(table, v_pad):
    v = table.shape[0]
    tp = jnp.full((v_pad, v_pad), jnp.float32(_NEG))
    return tp.at[:v, :v].set(table.astype(jnp.float32))


def _pick_tile(n):
    n8 = _round_up(n, _SUBLANE)
    tile_n = min(_MAX_TILE_N,
                 max(_MIN_TILE_N, _round_up(pl.cdiv(n, _TARGET_TILES), _SUBLANE)))
    return min(tile_n, n8)


def bigram_forward(idx, table, targets=None):
    """Pallas equivalent of BigramLanguageModel.forward.

    idx:     (B, T) int32
    table:   (V, V) float32
    targets: (B, T) int32 or None

    Returns (logits, loss):
      - targets is None  -> logits (B, T, V), loss None
      - targets given    -> logits (B*T, V), loss scalar float32
    """
    B, T = idx.shape
    V = table.shape[0]
    N = B * T

    v_pad = _round_up(V, _LANE)
    tile_n = _pick_tile(N)
    n_pad = _round_up(N, tile_n)
    num_tiles = n_pad // tile_n

    table_p = _pad_table(table, v_pad)

    table_spec = pl.BlockSpec((v_pad, v_pad), lambda i: (0, 0))   # resident across the grid
    logits_spec = pl.BlockSpec((tile_n, V), lambda i: (i, 0))     # native-width, no wrapper slice

    # VMEM budget: double-buffered logits + id tiles + kernel temporaries + resident table,
    # capped at 48 MiB to leave headroom on v7x (64 MiB physical per TC).
    vmem_limit = int(min(48 << 20, 8 * tile_n * _LANE * 4 + (8 << 20)))
    compiler_params = pltpu.CompilerParams(
        dimension_semantics=("parallel",),
        vmem_limit_bytes=vmem_limit,
    )

    if targets is None:
        idx_p = jnp.zeros((n_pad, 1), jnp.int32).at[:N, 0].set(
            idx.reshape(N).astype(jnp.int32))
        cost = pl.CostEstimate(
            flops=2 * n_pad * v_pad * v_pad,
            transcendentals=0,
            bytes_accessed=n_pad * (V * 4 + 4) + v_pad * v_pad * 4,
        )
        logits_p = pl.pallas_call(
            _bigram_infer_kernel,
            out_shape=jax.ShapeDtypeStruct((n_pad, V), jnp.float32),
            grid=(num_tiles,),
            in_specs=[pl.BlockSpec((tile_n, 1), lambda i: (i, 0)), table_spec],
            out_specs=logits_spec,
            compiler_params=compiler_params,
            cost_estimate=cost,
        )(idx_p, table_p)
        logits = logits_p if n_pad == N else logits_p[:N]
        return logits.reshape(B, T, V), None

    # Pack idx + targets into one lane-adjacent int32 stream: one contiguous
    # 8 B/row DMA instead of two 4 B strided streams.
    packed = jnp.stack([idx.reshape(N).astype(jnp.int32),
                        targets.reshape(N).astype(jnp.int32)], axis=1)
    if n_pad != N:
        packed = jnp.pad(packed, ((0, n_pad - N), (0, 0)))

    cost = pl.CostEstimate(
        flops=2 * n_pad * v_pad * v_pad + 10 * n_pad * v_pad,
        transcendentals=n_pad * v_pad + n_pad,
        bytes_accessed=n_pad * (V * 4 + 8) + v_pad * v_pad * 4 + num_tiles * 4,
    )
    kernel = functools.partial(_bigram_train_kernel, n_valid=N)
    logits_p, loss_part = pl.pallas_call(
        kernel,
        out_shape=(
            jax.ShapeDtypeStruct((n_pad, V), jnp.float32),
            jax.ShapeDtypeStruct((num_tiles, 1, 1), jnp.float32),
        ),
        grid=(num_tiles,),
        in_specs=[pl.BlockSpec((tile_n, 2), lambda i: (i, 0)), table_spec],
        out_specs=(logits_spec, pl.BlockSpec((1, 1, 1), lambda i: (i, 0, 0))),
        compiler_params=compiler_params,
        cost_estimate=cost,
    )(packed, table_p)

    logits = logits_p if n_pad == N else logits_p[:N]
    loss = jnp.sum(loss_part) / jnp.float32(N)
    return logits, loss


# ---------------------------------------------------------------------------
# Self-test
# ---------------------------------------------------------------------------

if __name__ == "__main__":
    key = jax.random.PRNGKey(0)
    k_tab, k_idx, k_tgt, k_idx2, k_tgt2 = jax.random.split(key, 5)

    vocab_size = 65   # e.g. tiny-shakespeare character vocab
    # nn.Embedding default init: N(0, 1)
    table = jax.random.normal(k_tab, (vocab_size, vocab_size), dtype=jnp.float32)

    def reference(idx, table, targets):
        Bb, Tt = idx.shape
        logits = table[idx.reshape(-1)]
        if targets is None:
            return logits.reshape(Bb, Tt, -1), None
        lse = jax.scipy.special.logsumexp(logits, axis=-1)
        tgt = targets.reshape(-1)
        loss = jnp.mean(lse - logits[jnp.arange(Bb * Tt), tgt])
        return logits, loss

    # ---- small case (single tile) ----
    B, T = 2, 8
    idx = jax.random.randint(k_idx, (B, T), 0, vocab_size, dtype=jnp.int32)
    targets = jax.random.randint(k_tgt, (B, T), 0, vocab_size, dtype=jnp.int32)

    logits, loss = bigram_forward(idx, table, targets)
    logits, loss = jax.block_until_ready((logits, loss))
    ref_logits, ref_loss = reference(idx, table, targets)
    assert logits.shape == (B * T, vocab_size)
    assert jnp.allclose(logits, ref_logits, atol=1e-5)
    assert jnp.allclose(loss, ref_loss, atol=1e-4)

    logits_inf, loss_none = bigram_forward(idx, table, None)
    logits_inf = jax.block_until_ready(logits_inf)
    ref_logits_inf, _ = reference(idx, table, None)
    assert logits_inf.shape == (B, T, vocab_size)
    assert loss_none is None
    assert jnp.allclose(logits_inf, ref_logits_inf, atol=1e-5)

    # ---- larger case: exercises multiple grid tiles + "parallel" axis ----
    B2, T2 = 4, 1024   # N = 4096 -> four 1024-row tiles (megacore-friendly)
    idx2 = jax.random.randint(k_idx2, (B2, T2), 0, vocab_size, dtype=jnp.int32)
    targets2 = jax.random.randint(k_tgt2, (B2, T2), 0, vocab_size, dtype=jnp.int32)
    logits2, loss2 = bigram_forward(idx2, table, targets2)
    logits2, loss2 = jax.block_until_ready((logits2, loss2))
    ref_logits2, ref_loss2 = reference(idx2, table, targets2)
    assert logits2.shape == (B2 * T2, vocab_size)
    assert jnp.allclose(logits2, ref_logits2, atol=1e-5)
    assert jnp.allclose(loss2, ref_loss2, atol=1e-4, rtol=1e-5)

    print("KERNEL_OK")
</pallas_src>

<mosaic_0001>
module attributes {stable_mosaic.version = 11 : i64} {
  func.func @_bigram_train_kernel(%arg0: i32, %arg1: memref<16x2xi32, #tpu.memory_space<vmem>>, %arg2: memref<128x128xf32, #tpu.memory_space<vmem>>, %arg3: memref<16x65xf32, #tpu.memory_space<vmem>>, %arg4: memref<1x1x1xf32, #tpu.memory_space<vmem>>) attributes {dimension_semantics = [#tpu.dimension_semantics<parallel>], iteration_bounds = array<i64: 1>, scalar_prefetch = 0 : i64, scratch_operands = 0 : i64, tpu.core_type = #tpu.core_type<tc>, window_params = [{transform_indices = @transform_0, window_bounds = array<i64: 16, 2>}, {pipeline_mode = #tpu.pipeline_mode<synchronous>, transform_indices = @transform_1, window_bounds = array<i64: 128, 128>}, {transform_indices = @transform_2, window_bounds = array<i64: 16, 65>}, {transform_indices = @transform_3, window_bounds = array<i64: 1, 1, 1>}]} {
    %0 = tpu.iota {dimensions = array<i32: 1>} : vector<1x128xi32>
    %c0 = arith.constant 0 : index
    %c0_0 = arith.constant 0 : index
    %1 = vector.load %arg1[%c0, %c0_0] : memref<16x2xi32, #tpu.memory_space<vmem>>, vector<16x1xi32>
    %c0_1 = arith.constant 0 : index
    %c1 = arith.constant 1 : index
    %2 = vector.load %arg1[%c0_1, %c1] : memref<16x2xi32, #tpu.memory_space<vmem>>, vector<16x1xi32>
    %3 = vector.broadcast %0 : vector<1x128xi32> to vector<16x128xi32>
    %4 = vector.broadcast %1 : vector<16x1xi32> to vector<16x128xi32>
    %5 = arith.cmpi eq, %3, %4 : vector<16x128xi32>
    %6 = arith.extui %5 : vector<16x128xi1> to vector<16x128xi32>
    %7 = arith.sitofp %6 : vector<16x128xi32> to vector<16x128xf32>
    %c0_2 = arith.constant 0 : index
    %c0_3 = arith.constant 0 : index
    %8 = vector.load %arg2[%c0_2, %c0_3] : memref<128x128xf32, #tpu.memory_space<vmem>>, vector<128x128xf32>
    %cst = arith.constant dense<0.000000e+00> : vector<16x128xf32>
    %9 = tpu.matmul %7, %8, %cst {dimension_numbers = #tpu.dot_dimension_numbers<[1], [0], [0], [1], [0, 0, 1, 1], [], []>} : vector<16x128xf32>, vector<128x128xf32>, vector<16x128xf32> -> vector<16x128xf32>
    %10 = vector.extract_strided_slice %9 {offsets = [0, 0], sizes = [16, 65], strides = [1, 1]} : vector<16x128xf32> to vector<16x65xf32>
    %c0_4 = arith.constant 0 : index
    %c0_5 = arith.constant 0 : index
    %11 = vector.load %arg3[%c0_4, %c0_5] : memref<16x65xf32, #tpu.memory_space<vmem>>, vector<16x65xf32>
    tpu.vector_store %arg3[%c0_4, %c0_5], %10 {strides = array<i32>} : memref<16x65xf32, #tpu.memory_space<vmem>>, vector<16x65xf32>,
    %cst_6 = arith.constant dense<0xFF800000> : vector<16xf32>
    %12 = vector.multi_reduction <maximumf>, %9, %cst_6 [1] : vector<16x128xf32> to vector<16xf32>
    %13 = vector.shape_cast %12 : vector<16xf32> to vector<16x1xf32>
    %14 = vector.broadcast %13 : vector<16x1xf32> to vector<16x128xf32>
    %15 = arith.subf %9, %14 : vector<16x128xf32>
    %16 = math.exp %15 : vector<16x128xf32>
    %cst_7 = arith.constant dense<0.000000e+00> : vector<16xf32>
    %17 = vector.multi_reduction <add>, %16, %cst_7 [1] : vector<16x128xf32> to vector<16xf32>
    %18 = vector.shape_cast %17 : vector<16xf32> to vector<16x1xf32>
    %19 = math.log %18 : vector<16x1xf32>
    %20 = arith.addf %13, %19 : vector<16x1xf32>
    %21 = vector.broadcast %0 : vector<1x128xi32> to vector<16x128xi32>
    %22 = vector.broadcast %2 : vector<16x1xi32> to vector<16x128xi32>
    %23 = arith.cmpi eq, %21, %22 : vector<16x128xi32>
    %cst_8 = arith.constant 0.000000e+00 : f32
    %24 = vector.broadcast %cst_8 : f32 to vector<16x128xf32>
    %25 = arith.select %23, %9, %24 : vector<16x128xi1>, vector<16x128xf32>
    %cst_9 = arith.constant dense<0.000000e+00> : vector<16xf32>
    %26 = vector.multi_reduction <add>, %25, %cst_9 [1] : vector<16x128xf32> to vector<16xf32>
    %27 = vector.shape_cast %26 : vector<16xf32> to vector<16x1xf32>
    %c16_i32 = arith.constant 16 : i32
    %28 = arith.muli %arg0, %c16_i32 : i32
    %29 = tpu.iota {dimensions = array<i32: 0>} : vector<16x1xi32>
    %30 = vector.broadcast %28 : i32 to vector<16x1xi32>
    %31 = arith.addi %30, %29 : vector<16x1xi32>
    %c16_i32_10 = arith.constant 16 : i32
    %32 = vector.broadcast %c16_i32_10 : i32 to vector<16x1xi32>
    %33 = arith.cmpi slt, %31, %32 : vector<16x1xi32>
    %34 = arith.subf %20, %27 : vector<16x1xf32>
    %cst_11 = arith.constant 0.000000e+00 : f32
    %35 = vector.broadcast %cst_11 : f32 to vector<16x1xf32>
    %36 = arith.select %33, %34, %35 : vector<16x1xi1>, vector<16x1xf32>
    %cst_12 = arith.constant dense<0.000000e+00> : vector<1xf32>
    %37 = vector.multi_reduction <add>, %36, %cst_12 [0] : vector<16x1xf32> to vector<1xf32>
    %38 = vector.shape_cast %37 : vector<1xf32> to vector<1x1xf32>
    %39 = vector.shape_cast %38 : vector<1x1xf32> to vector<1x1x1xf32>
    %c0_13 = arith.constant 0 : index
    %c0_14 = arith.constant 0 : index
    %c0_15 = arith.constant 0 : index
    %40 = vector.load %arg4[%c0_13, %c0_14, %c0_15] : memref<1x1x1xf32, #tpu.memory_space<vmem>>, vector<1x1x1xf32>
    tpu.vector_store %arg4[%c0_13, %c0_14, %c0_15], %39 {strides = array<i32>} : memref<1x1x1xf32, #tpu.memory_space<vmem>>, vector<1x1x1xf32>,
    return
  }
  func.func @transform_0(%arg0: i32) -> (i32, i32) {
    %c0_i32 = arith.constant 0 : i32
    %c0_i32_0 = arith.constant 0 : i32
    return %arg0, %c0_i32 : i32, i32
  }
  func.func @transform_1(%arg0: i32) -> (i32, i32) {
    %c0_i32 = arith.constant 0 : i32
    %c0_i32_0 = arith.constant 0 : i32
    %c0_i32_1 = arith.constant 0 : i32
    return %c0_i32, %c0_i32_0 : i32, i32
  }
  func.func @transform_2(%arg0: i32) -> (i32, i32) {
    %c0_i32 = arith.constant 0 : i32
    %c0_i32_0 = arith.constant 0 : i32
    return %arg0, %c0_i32 : i32, i32
  }
  func.func @transform_3(%arg0: i32) -> (i32, i32, i32) {
    %c0_i32 = arith.constant 0 : i32
    %c0_i32_0 = arith.constant 0 : i32
    %c0_i32_1 = arith.constant 0 : i32
    return %arg0, %c0_i32, %c0_i32_0 : i32, i32, i32
  }
}

</mosaic_0001>

<bundles_post_ra>
// kernel: tpu_custom_call.1
= control target key start
LH: loop header
LB: loop body
LE: loop exit
PB: predicated region body
PF: predicated region fallthrough
CT: control target
= control target key end

     0   :  { %9 = vsyncpa [#allocation3], 0  ;;  %s421_s0 = inlined_call_operand.vmem [shape: s32[16,2], index: 0, kind: input, shape index: {}]   ;;  %s422_s1 = inlined_call_operand.hbm [shape: f32[128,128], index: 1, kind: input, shape index: {}]   ;;  %s423_s2 = inlined_call_operand.hbm [shape: f32[16,65], index: 2, kind: output, shape index: {0}]   ;;  %s424_s3 = inlined_call_operand.hbm [shape: f32[1,1,1], index: 3, kind: output, shape index: {1}]  }
   0x1   :  { %10 = vsyncpa [#allocation4], 0 }
   0x2   :  { %11 = vsyncpa [#allocation7], 0  ;;  %s368_s12 = smov [#allocation2]  }
   0x3   :  { %s19_s13 = sshll.u32 %s368_s12, 4  ;;  %s20_s13 = int_to_ptr.vmem [resolvable:$true] %s19_s13 }
   0x4   :  { %s310_s14 = scalar_lea.vmem %s20_s13, 2048  ;;  %p315_p1 = scmp.lt.s32.totalorder %s20_s13, %s20_s13 }
   0x5   :  { %p311_p0 = scmp.ne.s32.totalorder %s20_s13, %s310_s14  ;;  %p316_p2 = scmp.lt.s32.totalorder %s310_s14, %s310_s14 }
   0x7   :  { %p317_p3 = por %p316_p2, %p315_p1 }
   0x9   :  { %p318_p4 = pnand %p317_p3, %p311_p0 }
   0xb   :  { %321 = shalt.err (!%p318_p4)
}
   0xc   :  { %s369_s15 = smov 128   ;;  %s370_s16 = smov 8  }
   0xd   :  { %25 = dma.hbm_to_vmem [thread:$0]  %s422_s1, 2048, %s20_s13, [#allocation3], %s369_s15, %s369_s15, %s370_s16  }
   0xe   :  { %362 = dma.done.wait [#allocation3], 2048  }
   0xf   :  { %363 = vsyncadd [#allocation3], 4294965248  ;;  %v371_v0 = vmov 0   ;;  %v31_v1 = vld [vmem:[%s421_s0] sm:$0xff]  ;;  %v60_v2 = vld [vmem:[#allocation2 + $0x78] sm:$0xff]  ;;  %v372_v6 = vmov 1   ;;  %v29_v20 = vlaneseq }
  0x10   :  { %291 = vset.pattern.permute.xlu0 %v371_v0  ;;  %248 = vmatprep.subr.mxu0 %v60_v2  ;;  %v59_v3 = vld [vmem:[#allocation2 + $0x70] sm:$0xff]  ;;  %v408_v4 = vld [vmem:[%s421_s0 + $0x8] sm:$0xff]  ;;  %v57_v7 = vld [vmem:[#allocation2 + $0x60] sm:$0xff]  ;;  %v373_v23 = vmov 1.0   ;;  %vm136_vm2 = vcmask 531456   ;;  %s374_s0 = smov [#allocation5]  }
  0x11   :  { %34 = vperm.xlu0 %291, %v31_v1   ;;  %249 = vmatpush3.msra.mxu0 %v60_v2  ;;  %v58_v5 = vld [vmem:[#allocation2 + $0x68] sm:$0xff]  ;;  %v56_v8 = vld [vmem:[#allocation2 + $0x58] sm:$0xff]  ;;  %v55_v9 = vld [vmem:[#allocation2 + $0x50] sm:$0xff]  ;;  %v30_v21 = vand.u32 127, %v29_v20  ;;  %s200_s1 = sshll.u32 %s374_s0, 4  ;;  %s201_s1 = int_to_ptr.vmem [resolvable:$true] %s200_s1 }
  0x12   :  { %250 = vmatprep.subr.mxu0 %v59_v3  ;;  %293 = vset.pattern.permute.xlu1 %v372_v6  ;;  %v54_v10 = vld [vmem:[#allocation2 + $0x48] sm:$0xff]  ;;  %v53_v11 = vld [vmem:[#allocation2 + $0x40] sm:$0xff]  ;;  %v52_v12 = vld [vmem:[#allocation2 + $0x38] sm:$0xff]  ;;  %s322_s23 = scalar_lea.vmem %s201_s1, 256  ;;  %p327_p6 = scmp.lt.s32.totalorder %s201_s1, %s201_s1 }
  0x13   :  { %251 = vmatpush3.msra.mxu0 %v59_v3  ;;  %v51_v13 = vld [vmem:[#allocation2 + $0x30] sm:$0xff]  ;;  %v50_v14 = vld [vmem:[#allocation2 + $0x28] sm:$0xff]  ;;  %v49_v15 = vld [vmem:[#allocation2 + $0x20] sm:$0xff]  ;;  %p323_p5 = scmp.ne.s32.totalorder %s201_s1, %s322_s23  ;;  %p328_p7 = scmp.lt.s32.totalorder %s322_s23, %s322_s23 }
  0x14   :  { %252 = vmatprep.subr.mxu0 %v58_v5  ;;  %v48_v16 = vld [vmem:[#allocation2 + $0x18] sm:$0xff]  ;;  %v47_v17 = vld [vmem:[#allocation2 + $0x10] sm:$0xff]  ;;  %v46_v18 = vld [vmem:[#allocation2 + $0x8] sm:$0xff] }
  0x15   :  { %37 = vperm.xlu0 %291, %v408_v4   ;;  %253 = vmatpush3.msra.mxu0 %v58_v5  ;;  %v45_v19 = vld [vmem:[#allocation2] sm:$0xff]  ;;  %p329_p8 = por %p328_p7, %p327_p6 }
  0x16   :  { %254 = vmatprep.subr.mxu0 %v57_v7 }
  0x17   :  { %255 = vmatpush3.msra.mxu0 %v57_v7  ;;  %p330_p9 = pnand %p329_p8, %p323_p5 }
  0x18   :  { %256 = vmatprep.subr.mxu0 %v56_v8 }
  0x19   :  { %292 = vset.pattern.permute.xlu0 %v372_v6  ;;  %257 = vmatpush3.msra.mxu0 %v56_v8 }
  0x1a   :  { %160 = vperm.xlu0 %292, %v31_v1   ;;  %258 = vmatprep.subr.mxu0 %v55_v9 }
  0x1b   :  { %259 = vmatpush3.msra.mxu0 %v55_v9 }
  0x1c   :  { %260 = vmatprep.subr.mxu0 %v54_v10 }
  0x1d   :  { %261 = vmatpush3.msra.mxu0 %v54_v10 }
  0x1e   :  { %262 = vmatprep.subr.mxu0 %v53_v11 }
  0x1f   :  { %263 = vmatpush3.msra.mxu0 %v53_v11 }
  0x20   :  { %264 = vmatprep.subr.mxu0 %v52_v12 }
  0x21   :  { %265 = vmatpush3.msra.mxu0 %v52_v12 }
  0x22   :  { %266 = vmatprep.subr.mxu0 %v51_v13 }
  0x23   :  { %267 = vmatpush3.msra.mxu0 %v51_v13 }
  0x24   :  { %268 = vmatprep.subr.mxu0 %v50_v14 }
  0x25   :  { %269 = vmatpush3.msra.mxu0 %v50_v14 }
  0x26   :  { %270 = vmatprep.subr.mxu0 %v49_v15 }
  0x27   :  { %271 = vmatpush3.msra.mxu0 %v49_v15 }
  0x28   :  { %272 = vmatprep.subr.mxu0 %v48_v16 }
  0x29   :  { %273 = vmatpush3.msra.mxu0 %v48_v16 }
  0x2a   :  { %274 = vmatprep.subr.mxu0 %v47_v17 }
  0x2b   :  { %275 = vmatpush3.msra.mxu0 %v47_v17 }
  0x2c   :  { %276 = vmatprep.subr.mxu0 %v46_v18 }
  0x2d   :  { %277 = vmatpush3.msra.mxu0 %v46_v18 }
  0x2e   :  { %278 = vmatprep.subr.mxu0 %v45_v19 }
  0x2f   :  { %279 = vmatpush3.msra.mxu0 %v45_v19 }
  0x8c   :  { %v35_v22 = vpop.permute.xlu0 %34 }
  0x8d   :  { %vm39_vm0 = vcmp.eq.s32.totalorder %v30_v21, %v35_v22 }
  0x8e   :  { %280 = vmatprep.mubr.msk.f32.mxu0 %vm39_vm0, %v373_v23 }
  0x90   :  { %v38_v24 = vpop.permute.xlu0 %37 }
  0x91   :  { %vm40_vm1 = vcmp.eq.s32.totalorder %v30_v21, %v38_v24 }
  0x92   :  { %281 = vmatmul.mubr.msk.f32.vlgmr.msra.gmra.mxu0 %vm40_vm1, %v373_v23 }
  0x95   :  { %v161_v33 = vpop.permute.xlu0 %160 }
  0x96   :  { %vm165_vm3 = vcmp.eq.s32.totalorder %v30_v21, %v161_v33 }
 0x152   :  { %v282_v25 = vpop.f32.mrf.mxu0 }
 0x153   :  { %138 = vst.msk [vmem:[#allocation5 + $0x8] sm:$0xff] %vm136_vm2, %v282_v25 }
 0x154   :  { %v127_v26 = vpop.f32.mrf.mxu0 }
 0x155   :  { %139 = vmax.xlane.f32.xlu1 %v127_v26  ;;  %137 = vst.msk [vmem:[#allocation5] sm:$0xff] %vm136_vm2, %v127_v26  ;;  %v167_v37 = vsel %vm165_vm3, %v127_v26, 0.0 }
 0x159   :  { %141 = vmax.xlane.f32.xlu1 %v282_v25 }
 0x16a   :  { %163 = vperm.xlu1 %293, %v408_v4  }
 0x1de   :  { %v140_v27 = vpop.xlane.xlu1 %139 }
 0x1df   :  { %v143_v28 = vsub.f32 %v127_v26, %v140_v27 }
 0x1e1   :  { %v145_v29 = vmul.f32 1.442695, %v143_v28 }
 0x1e2   :  { %v142_v30 = vpop.xlane.xlu1 %141 }
 0x1e3   :  { %294 = vpow2.f32 %v145_v29  ;;  %v144_v31 = vsub.f32 %v282_v25, %v142_v30 }
 0x1e5   :  { %v147_v32 = vmul.f32 1.442695, %v144_v31 }
 0x1e6   :  { %v164_v35 = vpop.permute.xlu1 %163 }
 0x1e7   :  { %296 = vpow2.f32 %v147_v32  ;;  %vm166_vm4 = vcmp.eq.s32.totalorder %v30_v21, %v164_v35 }
 0x1e8   :  { %v168_v38 = vsel %vm166_vm4, %v282_v25, 0.0 }
 0x1f0   :  { %v295_v34 = vpop.eup %294 }
 0x1f1   :  { %149 = vadd.xlane.f32.xlu0 %v295_v34 }
 0x1f4   :  { %v297_v36 = vpop.eup %296 }
 0x1f5   :  { %151 = vadd.xlane.f32.xlu1 %v297_v36  ;;  %169 = vadd.xlane.f32.xlu0 %v167_v37 }
 0x1f9   :  { %171 = vadd.xlane.f32.xlu0 %v168_v38 }
 0x1fa   :  { %333 = shalt.err (!%p330_p9)
}
 0x1fb   :  { %206 = dma.vmem_to_hbm [thread:$0]  %s201_s1, 256, %s423_s2, [#allocation4], %s369_s15, %s369_s15, %s370_s16   ;;  %vm193_vm5 = vcmask 0  }
 0x1fc   :  { %s375_s2 = smov [#allocation6]  }
 0x1fd   :  { %s213_s26 = sshll.u32 %s375_s2, 4  ;;  %s214_s26 = int_to_ptr.vmem [resolvable:$true] %s213_s26 }
 0x1fe   :  { %s342_s27 = scalar_lea.vmem %s214_s26, 16  ;;  %s346_s28 = scalar_lea.vmem %s214_s26, 32 }
 0x1ff   :  { %p343_p10 = scmp.ne.s32.totalorder %s214_s26, %s342_s27  ;;  %p347_p11 = scmp.lt.s32.totalorder %s214_s26, %s214_s26 }
 0x200   :  { %p348_p12 = scmp.lt.s32.totalorder %s346_s28, %s342_s27 }
 0x202   :  { %p349_p13 = por %p348_p12, %p347_p11 }
 0x204   :  { %p350_p0 = pnand %p349_p13, %p343_p10 }
 0x27a   :  { %v150_v39 = vpop.xlane.xlu0 %149 }
 0x27b   :  { %298 = vlog2.f32 %v150_v39 }
 0x27e   :  { %v152_v40 = vpop.xlane.xlu1 %151  ;;  %v170_v43 = vpop.xlane.xlu0 %169 }
 0x27f   :  { %300 = vlog2.f32 %v152_v40 }
 0x282   :  { %v172_v48 = vpop.xlane.xlu0 %171 }
 0x288   :  { %v299_v41 = vpop.eup %298 }
 0x289   :  { %v154_v42 = vmul.f32 0.6931472, %v299_v41 }
 0x28b   :  { %v157_v46 = vadd.f32 %v154_v42, %v140_v27 }
 0x28c   :  { %v301_v44 = vpop.eup %300 }
 0x28d   :  { %v156_v45 = vmul.f32 0.6931472, %v301_v44  ;;  %v182_v49 = vsub.f32 %v157_v46, %v170_v43 }
 0x28f   :  { %v158_v47 = vadd.f32 %v156_v45, %v142_v30 }
 0x291   :  { %v183_v50 = vsub.f32 %v158_v47, %v172_v48 }
 0x293   :  { %v186_v51 = vadd.f32 %v183_v50, %v182_v49 }
 0x295   :  { %v187_v52 = vrot.slane %v186_v51, 4 }
 0x297   :  { %v188_v53 = vadd.f32 %v187_v52, %v186_v51 }
 0x299   :  { %v189_v54 = vrot.slane %v188_v53, 2 }
 0x29b   :  { %v190_v55 = vadd.f32 %v189_v54, %v188_v53 }
 0x29d   :  { %v191_v56 = vrot.slane %v190_v55, 1 }
 0x29f   :  { %v192_v57 = vadd.f32 %v191_v56, %v190_v55 }
 0x2a1   :  { %194 = vst.msk [vmem:[#allocation6] sm:$0x1] %vm193_vm5, %v192_v57 }
 0x2a2   :  { %353 = shalt.err (!%p350_p0)
}
 0x2a3   :  { %216 = dma.vmem_to_hbm [thread:$0]  %s214_s26, 16, %s424_s3, [#allocation7]  }
 0x2a4   :  { %364 = dma.done.wait [#allocation4], 256  }
 0x2a5   :  { %365 = vsyncadd [#allocation4], 4294967040 }
 0x2a6   :  { %366 = dma.done.wait [#allocation7], 16  }
 0x2a7   :  { %367 = vsyncadd [#allocation7], 4294967280 }
 0x2a8   :  { %223 = vsyncpa [#allocation3], 1 }
 0x2a9   :  { %224 = vsyncpa [#allocation4], 1 }
 0x2aa   :  { %225 = vsyncpa [#allocation7], 1 }

</bundles_post_ra>
